<compile_context>
chip_gen: v7x
topology: tpu7x:2x2x1
jax: 0.10.0
libtpu: 0.0.40
codegen_flags: <defaults>
</compile_context>

<pallas_src>
import jax
import jax.numpy as jnp
from jax.experimental import pallas as pl
from jax.experimental.pallas import tpu as pltpu


def _round_up(x, m):
    return ((x + m - 1) // m) * m


def _nice_row_tile(n_rows, tm_target):
    """Power-of-two row tile covering n_rows (capped at tm_target): small inputs
    get an MXU-friendly M tile instead of an odd multiple of 8."""
    if n_rows >= tm_target:
        return tm_target
    t = 8
    while t < n_rows:
        t *= 2
    return t


def _pick_tff(d_ff_p, target):
    """Largest multiple of 128 that divides d_ff_p and is <= target."""
    t = max(128, min((target // 128) * 128, d_ff_p))
    while d_ff_p % t:
        t -= 128
    return t


def _pad_cast(a, shape, dtype):
    """Cast + zero-pad `a` to `shape`; no copy at all when already aligned."""
    shape = tuple(shape)
    if a.shape == shape and a.dtype == dtype:
        return a
    if a.shape == shape:
        return a.astype(dtype)
    out = jnp.zeros(shape, dtype)
    return out.at[tuple(slice(0, s) for s in a.shape)].set(a.astype(dtype))


def _vmem_footprint(tm, tff, tn, d_model_p, cbytes, obytes):
    per_step = (tm * d_model_p * cbytes        # x tile
                + d_model_p * tff * cbytes     # W1 tile
                + 8 * tff * 4                  # b1 tile (sublane-padded, f32)
                + tff * tn * cbytes            # W2 tile
                + 8 * tn * 4                   # b2 tile
                + tm * tn * obytes)            # out tile
    scratch = tm * tn * 4                      # f32 accumulator
    interm = tm * tff * 4 + tm * tff * cbytes  # h (f32) + cast copy for 2nd dot
    return 2 * per_step + scratch + interm     # 2x: double-buffered pipeline


def ffn_kernel(x_ref, w1_ref, b1_ref, w2_ref, b2_ref, o_ref, acc_ref):
    # grid = (row_blocks, out_blocks, ff_blocks); axis 2 reduces over d_ff chunks.
    # x_ref:  (tm, d_model_p)
    # w1_ref: (d_model_p, tff)   b1_ref: (1, tff)     [f32]
    # w2_ref: (tff, tn)          b2_ref: (1, tn)      [f32]
    # o_ref:  (tm, tn)           acc_ref: (tm, tn) f32 scratch
    k = pl.program_id(2)

    # linear_1 chunk + bias + ReLU (native-dtype MXU matmul, f32 accumulate).
    h = jnp.dot(x_ref[...], w1_ref[...], preferred_element_type=jnp.float32)
    h = jnp.maximum(h + b1_ref[...].astype(jnp.float32), 0.0)

    # dropout (eval mode) == identity: no scaling, no masking.
    # TODO(synk): training-mode dropout would need pltpu.prng_* mask generation.

    # linear_2 partial product, accumulated across d_ff chunks.
    partial = jnp.dot(h.astype(w2_ref.dtype), w2_ref[...],
                      preferred_element_type=jnp.float32)

    @pl.when(k == 0)
    def _():
        acc_ref[...] = partial          # init folded into first partial

    @pl.when(k != 0)
    def _():
        acc_ref[...] += partial

    @pl.when(k == pl.num_programs(2) - 1)
    def _():
        o_ref[...] = (acc_ref[...]
                      + b2_ref[...].astype(jnp.float32)).astype(o_ref.dtype)


def feed_forward(x, w1, b1, w2, b2, *, tm=512, tff=512, out_blocks=1,
                 compute_dtype=jnp.bfloat16):
    """x: (..., d_model). w1: (d_model, d_ff), w2: (d_ff, d_model). Returns x.shape."""
    orig_shape = x.shape
    d_model = orig_shape[-1]
    d_ff = w1.shape[1]
    x2d = x.reshape(-1, d_model)
    n_rows = x2d.shape[0]
    out_dtype = x.dtype
    cbytes = jnp.dtype(compute_dtype).itemsize
    obytes = jnp.dtype(out_dtype).itemsize

    # Lane dims padded to multiples of 128 (lane-dense unmasked stores). d_ff is
    # padded only to 128 (not to tff) so zero-column waste is bounded by <128.
    d_model_p = _round_up(d_model, 128)
    d_ff_p = _round_up(d_ff, 128)

    # Generation-aware VMEM capacity (128 MiB v5e/v6e, 64 MiB v7x).
    vmem_cap = 64 << 20
    try:
        vmem_cap = int(pltpu.get_tpu_info().vmem_capacity_bytes)
    except Exception:
        pass

    tm = _nice_row_tile(n_rows, tm)
    tff = _pick_tff(d_ff_p, tff)

    # Shrink tff (then tm) until the double-buffered footprint fits this chip.
    budget = int(vmem_cap * 0.8)
    while _vmem_footprint(tm, tff, d_model_p, d_model_p, cbytes, obytes) > budget:
        new_tff = _pick_tff(d_ff_p, max(128, tff // 2))
        if new_tff < tff:
            tff = new_tff
            continue
        if tm > 8:
            tm = max(8, tm // 2)
            continue
        break

    n_rows_p = _round_up(n_rows, tm)
    row_blocks = n_rows_p // tm

    # Optional second parallel axis over the output (d_model) dim: pass
    # out_blocks=2 on v7x for small-batch (row_blocks == 1) inputs so both
    # TensorCores get work. Default 1: it re-streams W1 and recomputes
    # linear_1 per output block, which hurts single-TC chips.
    if (out_blocks < 1 or d_model_p % out_blocks
            or (d_model_p // out_blocks) % 128):
        out_blocks = 1
    tn = d_model_p // out_blocks

    # Pad/cast (skipped when already aligned; in real use pre-pad the weights
    # once at parameter-prep time instead of per call).
    x_p = _pad_cast(x2d, (n_rows_p, d_model_p), compute_dtype)
    w1_p = _pad_cast(w1, (d_model_p, d_ff_p), compute_dtype)
    b1_p = _pad_cast(b1.reshape(1, -1), (1, d_ff_p), jnp.float32)
    w2_p = _pad_cast(w2, (d_ff_p, d_model_p), compute_dtype)
    b2_p = _pad_cast(b2.reshape(1, -1), (1, d_model_p), jnp.float32)

    grid = (row_blocks, out_blocks, d_ff_p // tff)

    footprint = _vmem_footprint(tm, tff, tn, d_model_p, cbytes, obytes)
    vmem_limit = int(footprint * 1.5) + (4 << 20)
    vmem_limit = max(vmem_limit, min(32 << 20, int(vmem_cap * 0.9)))
    vmem_limit = min(vmem_limit, int(vmem_cap * 0.9))

    out = pl.pallas_call(
        ffn_kernel,
        out_shape=jax.ShapeDtypeStruct((n_rows_p, d_model_p), out_dtype),
        grid_spec=pl.GridSpec(
            grid=grid,
            in_specs=[
                pl.BlockSpec((tm, d_model_p), lambda i, n, k: (i, 0)),   # x rows
                # TODO(synk): if profiling shows exposed weight DMA on v5e/v6e,
                # add pipeline_mode=pl.Buffered(3) to the W1/W2 specs.
                pl.BlockSpec((d_model_p, tff), lambda i, n, k: (0, k)),  # W1 chunk
                pl.BlockSpec((1, tff), lambda i, n, k: (0, k)),          # b1 chunk
                pl.BlockSpec((tff, tn), lambda i, n, k: (k, n)),         # W2 chunk
                pl.BlockSpec((1, tn), lambda i, n, k: (0, n)),           # b2 chunk
            ],
            out_specs=pl.BlockSpec((tm, tn), lambda i, n, k: (i, n)),
            scratch_shapes=[pltpu.VMEM((tm, tn), jnp.float32)],
        ),
        compiler_params=pltpu.CompilerParams(
            dimension_semantics=("parallel", "parallel", "arbitrary"),
            vmem_limit_bytes=vmem_limit),
    )(x_p, w1_p, b1_p, w2_p, b2_p)

    return out[:n_rows, :d_model].reshape(orig_shape)


def init_params(key, d_model, d_ff):
    """Deterministic init mimicking nn.Linear's uniform(-1/sqrt(fan_in), ...)."""
    k1, k2, k3, k4 = jax.random.split(key, 4)
    bound1 = 1.0 / (d_model ** 0.5)
    bound2 = 1.0 / (d_ff ** 0.5)
    # Stored as (in_features, out_features) so the kernel computes x @ W (= PyTorch weight.T).
    w1 = jax.random.uniform(k1, (d_model, d_ff), jnp.float32, -bound1, bound1)
    b1 = jax.random.uniform(k2, (d_ff,), jnp.float32, -bound1, bound1)
    w2 = jax.random.uniform(k3, (d_ff, d_model), jnp.float32, -bound2, bound2)
    b2 = jax.random.uniform(k4, (d_model,), jnp.float32, -bound2, bound2)
    return w1, b1, w2, b2


if __name__ == "__main__":
    key = jax.random.PRNGKey(0)
    k_x, k_p = jax.random.split(key)

    batch, seq, d_model, d_ff = 2, 8, 32, 1024
    x = jax.random.normal(k_x, (batch, seq, d_model), jnp.float32)
    w1, b1, w2, b2 = init_params(k_p, d_model, d_ff)

    # Pure-JAX f32 reference (eval-mode dropout == identity).
    ref = (jnp.maximum(x.reshape(-1, d_model) @ w1 + b1, 0.0) @ w2 + b2)
    ref = ref.reshape(batch, seq, d_model)

    # Structural exactness check with f32 compute.
    y32 = jax.block_until_ready(
        feed_forward(x, w1, b1, w2, b2, compute_dtype=jnp.float32))
    assert y32.shape == (batch, seq, d_model)
    assert jnp.allclose(y32, ref, atol=1e-4, rtol=1e-4)

    # Default fast path: bf16 MXU matmuls, f32 accumulation (looser tolerance).
    y = jax.block_until_ready(feed_forward(x, w1, b1, w2, b2))
    assert y.shape == (batch, seq, d_model)
    assert jnp.allclose(y, ref, atol=3e-2, rtol=3e-2)

    print("KERNEL_OK")
</pallas_src>

<mosaic_0001>
module attributes {stable_mosaic.version = 11 : i64} {
  func.func @ffn_kernel(%arg0: i32, %arg1: i32, %arg2: i32, %arg3: memref<16x128xf32, #tpu.memory_space<vmem>>, %arg4: memref<128x512xf32, #tpu.memory_space<vmem>>, %arg5: memref<1x512xf32, #tpu.memory_space<vmem>>, %arg6: memref<512x128xf32, #tpu.memory_space<vmem>>, %arg7: memref<1x128xf32, #tpu.memory_space<vmem>>, %arg8: memref<16x128xf32, #tpu.memory_space<vmem>>, %arg9: memref<16x128xf32, #tpu.memory_space<vmem>>) attributes {dimension_semantics = [#tpu.dimension_semantics<parallel>, #tpu.dimension_semantics<parallel>, #tpu.dimension_semantics<arbitrary>], iteration_bounds = array<i64: 1, 1, 2>, scalar_prefetch = 0 : i64, scratch_operands = 1 : i64, tpu.core_type = #tpu.core_type<tc>, window_params = [{transform_indices = @transform_0, window_bounds = array<i64: 16, 128>}, {transform_indices = @transform_1, window_bounds = array<i64: 128, 512>}, {transform_indices = @transform_2, window_bounds = array<i64: 1, 512>}, {transform_indices = @transform_3, window_bounds = array<i64: 512, 128>}, {transform_indices = @transform_4, window_bounds = array<i64: 1, 128>}, {transform_indices = @transform_5, window_bounds = array<i64: 16, 128>}]} {
    %c0 = arith.constant 0 : index
    %c0_0 = arith.constant 0 : index
    %0 = vector.load %arg3[%c0, %c0_0] : memref<16x128xf32, #tpu.memory_space<vmem>>, vector<16x128xf32>
    %c0_1 = arith.constant 0 : index
    %c0_2 = arith.constant 0 : index
    %1 = vector.load %arg4[%c0_1, %c0_2] : memref<128x512xf32, #tpu.memory_space<vmem>>, vector<128x512xf32>
    %cst = arith.constant dense<0.000000e+00> : vector<16x512xf32>
    %2 = tpu.matmul %0, %1, %cst {dimension_numbers = #tpu.dot_dimension_numbers<[1], [0], [0], [1], [0, 0, 1, 1], [], []>} : vector<16x128xf32>, vector<128x512xf32>, vector<16x512xf32> -> vector<16x512xf32>
    %c0_3 = arith.constant 0 : index
    %c0_4 = arith.constant 0 : index
    %3 = vector.load %arg5[%c0_3, %c0_4] : memref<1x512xf32, #tpu.memory_space<vmem>>, vector<1x512xf32>
    %4 = vector.broadcast %3 : vector<1x512xf32> to vector<16x512xf32>
    %5 = arith.addf %2, %4 : vector<16x512xf32>
    %cst_5 = arith.constant 0.000000e+00 : f32
    %6 = vector.broadcast %cst_5 : f32 to vector<16x512xf32>
    %7 = arith.maximumf %5, %6 : vector<16x512xf32>
    %c0_6 = arith.constant 0 : index
    %c0_7 = arith.constant 0 : index
    %8 = vector.load %arg6[%c0_6, %c0_7] : memref<512x128xf32, #tpu.memory_space<vmem>>, vector<512x128xf32>
    %cst_8 = arith.constant dense<0.000000e+00> : vector<16x128xf32>
    %9 = tpu.matmul %7, %8, %cst_8 {dimension_numbers = #tpu.dot_dimension_numbers<[1], [0], [0], [1], [0, 0, 1, 1], [], []>} : vector<16x512xf32>, vector<512x128xf32>, vector<16x128xf32> -> vector<16x128xf32>
    %c0_i32 = arith.constant 0 : i32
    %10 = arith.cmpi eq, %arg2, %c0_i32 : i32
    %11 = arith.extui %10 : i1 to i32
    %c0_i32_9 = arith.constant 0 : i32
    %12 = arith.cmpi ne, %11, %c0_i32_9 : i32
    scf.if %12 {
      %c0_13 = arith.constant 0 : index
      %c0_14 = arith.constant 0 : index
      %19 = vector.load %arg9[%c0_13, %c0_14] : memref<16x128xf32, #tpu.memory_space<vmem>>, vector<16x128xf32>
      tpu.vector_store %arg9[%c0_13, %c0_14], %9 {strides = array<i32>} : memref<16x128xf32, #tpu.memory_space<vmem>>, vector<16x128xf32>,
    } else {
    }
    %c0_i32_10 = arith.constant 0 : i32
    %13 = arith.cmpi ne, %arg2, %c0_i32_10 : i32
    %14 = arith.extui %13 : i1 to i32
    %c0_i32_11 = arith.constant 0 : i32
    %15 = arith.cmpi ne, %14, %c0_i32_11 : i32
    scf.if %15 {
      %c0_13 = arith.constant 0 : index
      %c0_14 = arith.constant 0 : index
      %19 = vector.load %arg9[%c0_13, %c0_14] : memref<16x128xf32, #tpu.memory_space<vmem>>, vector<16x128xf32>
      %20 = arith.addf %19, %9 : vector<16x128xf32>
      %c0_15 = arith.constant 0 : index
      %c0_16 = arith.constant 0 : index
      %21 = vector.load %arg9[%c0_15, %c0_16] : memref<16x128xf32, #tpu.memory_space<vmem>>, vector<16x128xf32>
      tpu.vector_store %arg9[%c0_15, %c0_16], %20 {strides = array<i32>} : memref<16x128xf32, #tpu.memory_space<vmem>>, vector<16x128xf32>,
    } else {
    }
    %c1_i32 = arith.constant 1 : i32
    %16 = arith.cmpi eq, %arg2, %c1_i32 : i32
    %17 = arith.extui %16 : i1 to i32
    %c0_i32_12 = arith.constant 0 : i32
    %18 = arith.cmpi ne, %17, %c0_i32_12 : i32
    scf.if %18 {
      %c0_13 = arith.constant 0 : index
      %c0_14 = arith.constant 0 : index
      %19 = vector.load %arg9[%c0_13, %c0_14] : memref<16x128xf32, #tpu.memory_space<vmem>>, vector<16x128xf32>
      %c0_15 = arith.constant 0 : index
      %c0_16 = arith.constant 0 : index
      %20 = vector.load %arg7[%c0_15, %c0_16] : memref<1x128xf32, #tpu.memory_space<vmem>>, vector<1x128xf32>
      %21 = vector.broadcast %20 : vector<1x128xf32> to vector<16x128xf32>
      %22 = arith.addf %19, %21 : vector<16x128xf32>
      %c0_17 = arith.constant 0 : index
      %c0_18 = arith.constant 0 : index
      %23 = vector.load %arg8[%c0_17, %c0_18] : memref<16x128xf32, #tpu.memory_space<vmem>>, vector<16x128xf32>
      tpu.vector_store %arg8[%c0_17, %c0_18], %22 {strides = array<i32>} : memref<16x128xf32, #tpu.memory_space<vmem>>, vector<16x128xf32>,
    } else {
    }
    return
  }
  func.func @transform_0(%arg0: i32, %arg1: i32, %arg2: i32) -> (i32, i32) {
    %c0_i32 = arith.constant 0 : i32
    %c0_i32_0 = arith.constant 0 : i32
    return %arg0, %c0_i32 : i32, i32
  }
  func.func @transform_1(%arg0: i32, %arg1: i32, %arg2: i32) -> (i32, i32) {
    %c0_i32 = arith.constant 0 : i32
    %c0_i32_0 = arith.constant 0 : i32
    return %c0_i32, %arg2 : i32, i32
  }
  func.func @transform_2(%arg0: i32, %arg1: i32, %arg2: i32) -> (i32, i32) {
    %c0_i32 = arith.constant 0 : i32
    %c0_i32_0 = arith.constant 0 : i32
    return %c0_i32, %arg2 : i32, i32
  }
  func.func @transform_3(%arg0: i32, %arg1: i32, %arg2: i32) -> (i32, i32) {
    %c0_i32 = arith.constant 0 : i32
    return %arg2, %arg1 : i32, i32
  }
  func.func @transform_4(%arg0: i32, %arg1: i32, %arg2: i32) -> (i32, i32) {
    %c0_i32 = arith.constant 0 : i32
    %c0_i32_0 = arith.constant 0 : i32
    return %c0_i32, %arg1 : i32, i32
  }
  func.func @transform_5(%arg0: i32, %arg1: i32, %arg2: i32) -> (i32, i32) {
    %c0_i32 = arith.constant 0 : i32
    return %arg0, %arg1 : i32, i32
  }
}

</mosaic_0001>

<bundles_post_ra>
// kernel: tpu_custom_call.1
= control target key start
LH: loop header
LB: loop body
LE: loop exit
PB: predicated region body
PF: predicated region fallthrough
CT: control target
= control target key end

     0   :  { %s2014_s0 = inlined_call_operand.hbm [shape: f32[16,128], index: 0, kind: input, shape index: {}]   ;;  %s2015_s1 = inlined_call_operand.hbm [shape: f32[128,1024], index: 1, kind: input, shape index: {}]   ;;  %s2016_s2 = inlined_call_operand.hbm [shape: f32[1,1024], index: 2, kind: input, shape index: {}]   ;;  %s2017_s3 = inlined_call_operand.hbm [shape: f32[1024,128], index: 3, kind: input, shape index: {}]   ;;  %s2018_s4 = inlined_call_operand.vmem [shape: f32[1,128], index: 4, kind: input, shape index: {}]   ;;  %s2019_s5 = inlined_call_operand.hbm [shape: f32[16,128], index: 5, kind: output, shape index: {}]  }
   0x1   :  { %2029 = sst [smem:[#allocation18_spill]] %s2015_s1 }
   0x2   :  { %10 = vsyncpa [#allocation4], 0 }
   0x3   :  { %11 = vsyncpa [#allocation7], 0 }
   0x4   :  { %13 = vsyncpa [#allocation7 + $0x1], 0 }
   0x5   :  { %14 = vsyncpa [#allocation10], 0 }
   0x6   :  { %16 = vsyncpa [#allocation10 + $0x1], 0 }
   0x7   :  { %17 = vsyncpa [#allocation5], 0  ;;  %s1600_s18 = smov 0   ;;  %s1602_s19 = smov 0  }
   0x8   :  { %s1604_s20 = smov 0   ;;  %s1606_s21 = smov 0  }
   0x9   :  { %s1608_s22 = smov 0   ;;  %s1610_s23 = smov 0  }
   0xa LB: > { %s35_s24 = sadd.s32 1, %s1551_s22  ;;  %s75_s25 = sadd.s32 1, %s1543_s20  ;;  %s1555_s23 = sphi %s1610_s23, %s23_s23   ;;  %s1551_s22 = sphi %s1608_s22, %s2051_s22   ;;  %s1547_s21 = sphi %s1606_s21, %s2050_s21   ;;  %s1543_s20 = sphi %s1604_s20, %s2049_s20   ;;  %s1539_s19 = sphi %s1602_s19, %s2048_s19   ;;  %s1535_s18 = sphi %s1600_s18, %s2047_s18  }
   0xb   : > { %p36_p0 = scmp.ge.s32.totalorder %s35_s24, 2  ;;  %p82_p1 = scmp.ne.s32.totalorder %s1543_s20, %s1539_s19 }
   0xc   : > { %p83_p2 = scmp.eq.s32.totalorder %s1555_s23, 0  ;;  %p1287_p4 = scmp.lt.s32.totalorder %s1555_s23, 2 }
   0xd   : > { %s2053_s24 = smov (%p36_p0, %s35_s24), 0  ;;  %s242_s27 = sand.u32 1, %s1555_s23  }
   0xe   : > { %2030 = sst [smem:[#allocation16_spill]] %s2053_s24  ;;  %p84_p3 = por %p83_p2, %p82_p1 }
   0xf   : > { %s72_s26 = ssub.s32 %s1551_s22, %s2053_s24  ;;  %s1642_s28 = sand.u32 1, %s1543_s20  }
  0x10   : > { %p73_p5 = scmp.eq.s32.totalorder %s72_s26, 0  ;;  %s1051_s29 = sshll.u32 %s1551_s22, 9 }
  0x11   : > { %s2020_s6 = sshll.u32 %s1642_s28, 9  ;;  %s2032_s1 = sld [smem:[#allocation18_spill]] }
  0x12   : > { %s1646_s30 = scalar_select %p73_p5, %s1543_s20, %s75_s25  }
  0x13   : > { %p1654_p6 = pnand %p1287_p4, %p84_p3  ;;  %s246_s11 = scalar_lea.vmem [#allocation6], %s2020_s6 }
  0x14   : > { %2031 = sst [smem:[#allocation17_spill]] %s1646_s30  ;;  %s253_s12 = sshll.u32 %s246_s11, 4  ;;  %s1660_s12 = int_to_ptr.vmem [resolvable:$true] %s253_s12 }
  0x15   : > { %s2033_s10 = scalar_select %p1654_p6, 1, 0 }
  0x16   : > { %s1662_s13 = scalar_lea.sflag [#allocation7], %s242_s27  ;;  %p1668_p8 = pneg %p1654_p6 }
  0x17   : > { %s1652_s9 = scalar_lea.hbm %s2032_s1, %s1051_s29  ;;  %s1354_s25 = scalar_lea.hbm %s2032_s1, 16384 }
  0x18   : > { %s1349_s14 = scalar_lea.hbm %s1652_s9, 8192  ;;  %p1355_p11 = scmp.lt.u32.totalorder %s1652_s9, %s2032_s1 }
  0x19   : > { %p1350_p7 = scmp.ne.s32.totalorder %s1652_s9, %s1349_s14  ;;  %p1356_p12 = scmp.lt.u32.totalorder %s1354_s25, %s1349_s14 }
  0x1a   : > { %s2034_s15 = scalar_select %p1668_p8, 1, 0 }
  0x1b   : > { %p1352_p9 = pnand %p1668_p8, %p1350_p7  ;;  %p1357_p13 = por %p1356_p12, %p1355_p11 }
  0x1c   : > { %p1358_p0 = scmp.lt.u32.totalorder %s1349_s14, %s1652_s9 }
  0x1d   : > { %p1353_p10 = pneg %p1352_p9 }
  0x1e   : > { %p1359_p1 = por %p1358_p0, %p1357_p13 }
  0x20   : > { %p1360_p2 = pnand %p1359_p1, %p1353_p10 }
  0x22   : > { %1363 = shalt.err (!%p1360_p2)
}
  0x23   : > { %s1364_s27 = scalar_lea.vmem %s1660_s12, 8192  ;;  %s1557_s7 = smov [#allocation6]  }
  0x24   : > { %p1365_p3 = scmp.ne.s32.totalorder %s1660_s12, %s1364_s27  ;;  %s1369_s8 = sshll.u32 %s1557_s7, 4  ;;  %s1370_s8 = int_to_ptr.vmem [resolvable:$false] %s1369_s8 }
  0x25   : > { %s1371_s11 = scalar_lea.vmem %s1370_s8, 16384  ;;  %p1372_p7 = scmp.lt.s32.totalorder %s1660_s12, %s1370_s8 }
  0x26   : > { %p1367_p4 = pnand %p1365_p3, %p1668_p8  ;;  %p1373_p9 = scmp.lt.s32.totalorder %s1371_s11, %s1364_s27 }
  0x28   : > { %p1368_p5 = pneg %p1367_p4  ;;  %p1374_p11 = por %p1373_p9, %p1372_p7 }
  0x2a   : > { %p1375_p12 = pnand %p1374_p11, %p1368_p5 }
  0x2c   : > { %1378 = shalt.err (!%p1375_p12)
}
  0x2d   : > { %s1558_s14 = smov 1024   ;;  %s1559_s16 = smov 512  }
  0x2e   : > { %s1560_s17 = smov 32   ;;  %s1693_s25 = sadd.s32 4294967295, %s1555_s23  }
  0x2f   : > { %1279 = dma.hbm_to_vmem [thread:$0]  (!%p1654_p6), %s1652_s9, 8192, %s1660_s12, %s1662_s13, %s1558_s14, %s1559_s16, %s1560_s17  }
  0x30   : > { %p88_p10 = scmp.ne.s32.totalorder %s1539_s19, %s1535_s18  ;;  %p2022_p13 = scmp.eq.s32.totalorder %s1693_s25, 0 }
  0x31   : > { %p1025_p0 = scmp.ge.s32.totalorder %s1555_s23, 1  ;;  %p207_p1 = scmp.lt.s32.totalorder %s1555_s23, 3 }
  0x32   : > { %p1702_p2 = por %p2022_p13, %p88_p10  ;;  %s1561_s9 = smov [#allocation3]  }
  0x33   : > { %p1706_p3 = pnand %p1025_p0, %p207_p1  ;;  %s222_s12 = sshll.u32 %s1561_s9, 4  ;;  %s1710_s12 = int_to_ptr.vmem [resolvable:$true] %s222_s12 }
  0x34   : > { %s2035_s26 = scalar_select %p1702_p2, 1, 0 }
  0x35   : > { %s2036_s29 = scalar_select %p1706_p3, 1, 0 }
  0x36   : > { %p1272_p4 = pneg %p1706_p3  ;;  %s1032_s18 = sshll.u32 %s1642_s28, 2 }
  0x37   : > { %s1052_s27 = sshll.u32 %s1551_s22, 6  ;;  %s267_s16 = scalar_lea.vmem [#allocation8], %s1032_s18 }
  0x38   : > { %p1718_p5 = pnand %p1272_p4, %p2022_p13  ;;  %s1725_s14 = scalar_lea.hbm %s2016_s2, %s1052_s27 }
  0x39   : > { %s275_s17 = sshll.u32 %s267_s16, 4  ;;  %s1379_s1 = scalar_lea.hbm %s2014_s0, 256  ;;  %s1727_s17 = int_to_ptr.vmem [resolvable:$true] %s275_s17 }
  0x3a   : > { %p1380_p7 = scmp.ne.s32.totalorder %s2014_s0, %s1379_s1  ;;  %p1381_p9 = pneg %p1718_p5 }
  0x3b   : > { %p1386_p10 = scmp.lt.u32.totalorder %s1379_s1, %s2014_s0 }
  0x3c   : > { %p1382_p11 = pnand %p1381_p9, %p1380_p7 }
  0x3e   : > { %p1383_p12 = pneg %p1382_p11 }
  0x40   : > { %p1388_p0 = pnand %p1386_p10, %p1383_p12 }
  0x42   : > { %1391 = shalt.err (!%p1388_p0)
}
  0x43   : > { %s1392_s18 = scalar_lea.vmem %s1710_s12, 256  ;;  %p1400_p2 = scmp.lt.s32.totalorder %s1710_s12, %s1710_s12 }
  0x44   : > { %p1393_p1 = scmp.ne.s32.totalorder %s1710_s12, %s1392_s18  ;;  %p1401_p3 = scmp.lt.s32.totalorder %s1392_s18, %s1392_s18 }
  0x46   : > { %p1395_p4 = pnand %p1393_p1, %p1381_p9  ;;  %p1402_p6 = por %p1401_p3, %p1400_p2 }
  0x48   : > { %p1396_p13 = pneg %p1395_p4 }
  0x4a   : > { %p1403_p8 = pnand %p1402_p6, %p1396_p13 }
  0x4c   : > { %1406 = shalt.err (!%p1403_p8)
}
  0x4d   : > { %s1562_s24 = smov 128   ;;  %s1563_s1 = smov 8  }
  0x4e   : > { %1275 = dma.hbm_to_vmem [thread:$0]  (!%p1718_p5), %s2014_s0, 256, %s1710_s12, [#allocation4], %s1562_s24, %s1562_s24, %s1563_s1  }
  0x4f   : > { %s1407_s27 = scalar_lea.hbm %s1725_s14, 64  ;;  %p2038_p8 = scmp.ne.s32.totalorder %s2034_s15, 0 }
  0x50   : > { %p1408_p6 = scmp.ne.s32.totalorder %s1725_s14, %s1407_s27  ;;  %s1412_s8 = scalar_lea.hbm %s2016_s2, 128 }
  0x51   : > { %p1413_p3 = scmp.lt.u32.totalorder %s1725_s14, %s2016_s2  ;;  %p1414_p7 = scmp.lt.u32.totalorder %s1412_s8, %s1407_s27 }
  0x52   : > { %p1410_p13 = pnand %p1408_p6, %p2038_p8  ;;  %p1416_p11 = scmp.lt.u32.totalorder %s1407_s27, %s1725_s14 }
  0x53   : > { %p1415_p9 = por %p1414_p7, %p1413_p3 }
  0x54   : > { %p1411_p2 = pneg %p1410_p13 }
  0x55   : > { %p1417_p12 = por %p1416_p11, %p1415_p9 }
  0x57   : > { %p1418_p10 = pnand %p1417_p12, %p1411_p2 }
  0x59   : > { %1421 = shalt.err (!%p1418_p10)
}
  0x5a   : > { %s1422_s12 = scalar_lea.vmem %s1727_s17, 64  ;;  %s1564_s7 = smov [#allocation8]  }
  0x5b   : > { %p1423_p5 = scmp.ne.s32.totalorder %s1727_s17, %s1422_s12  ;;  %s1427_s30 = sshll.u32 %s1564_s7, 4  ;;  %s1428_s30 = int_to_ptr.vmem [resolvable:$false] %s1427_s30 }
  0x5c   : > { %s1429_s6 = scalar_lea.vmem %s1428_s30, 128  ;;  %p1430_p4 = scmp.lt.s32.totalorder %s1727_s17, %s1428_s30 }
  0x5d   : > { %p1425_p0 = pnand %p1423_p5, %p2038_p8  ;;  %p1431_p6 = scmp.lt.s32.totalorder %s1429_s6, %s1422_s12 }
  0x5f   : > { %p1426_p1 = pneg %p1425_p0  ;;  %p1432_p13 = por %p1431_p6, %p1430_p4 }
  0x61   : > { %p1433_p3 = pnand %p1432_p13, %p1426_p1 }
  0x63   : > { %1436 = shalt.err (!%p1433_p3)
}
  0x64   : > { %p2039_p2 = scmp.ne.s32.totalorder %s2033_s10, 0  ;;  %s1053_s27 = sshll.u32 %s1551_s22, 13 }
  0x65   : > { %s2040_s16 = sshll.u32 %s1642_s28, 9  ;;  %s1781_s12 = scalar_lea.hbm %s2017_s3, %s1053_s27 }
  0x66   : > { %1282 = dma.hbm_to_vmem [thread:$0]  (!%p2039_p2), %s1725_s14, 64, %s1727_s17, %s1662_s13  }
  0x67   : > { %s286_s9 = scalar_lea.vmem [#allocation9], %s2040_s16  ;;  %s283_s7 = scalar_lea.sflag [#allocation10], %s1642_s28 }
  0x68   : > { %s294_s8 = sshll.u32 %s286_s9, 4  ;;  %s1437_s30 = scalar_lea.hbm %s1781_s12, 8192  ;;  %s1783_s8 = int_to_ptr.vmem [resolvable:$true] %s294_s8 }
  0x69   : > { %p1438_p7 = scmp.ne.s32.totalorder %s1781_s12, %s1437_s30  ;;  %s1442_s17 = scalar_lea.hbm %s2017_s3, 16384 }
  0x6a   : > { %p1443_p12 = scmp.lt.u32.totalorder %s1781_s12, %s2017_s3  ;;  %p1444_p10 = scmp.lt.u32.totalorder %s1442_s17, %s1437_s30 }
  0x6b   : > { %p1440_p9 = pnand %p1438_p7, %p2038_p8  ;;  %p1446_p0 = scmp.lt.u32.totalorder %s1437_s30, %s1781_s12 }
  0x6c   : > { %p1445_p5 = por %p1444_p10, %p1443_p12 }
  0x6d   : > { %p1441_p11 = pneg %p1440_p9 }
  0x6e   : > { %p1447_p1 = por %p1446_p0, %p1445_p5 }
  0x70   : > { %p1448_p4 = pnand %p1447_p1, %p1441_p11 }
  0x72   : > { %1451 = shalt.err (!%p1448_p4)
}
  0x73   : > { %s1452_s27 = scalar_lea.vmem %s1783_s8, 8192  ;;  %s1565_s9 = smov [#allocation9]  }
  0x74   : > { %p1453_p6 = scmp.ne.s32.totalorder %s1783_s8, %s1452_s27  ;;  %s1457_s11 = sshll.u32 %s1565_s9, 4  ;;  %s1458_s11 = int_to_ptr.vmem [resolvable:$false] %s1457_s11 }
  0x75   : > { %s1459_s18 = scalar_lea.vmem %s1458_s11, 16384  ;;  %p1460_p7 = scmp.lt.s32.totalorder %s1783_s8, %s1458_s11 }
  0x76   : > { %p1455_p13 = pnand %p1453_p6, %p2038_p8  ;;  %p1461_p9 = scmp.lt.s32.totalorder %s1459_s18, %s1452_s27 }
  0x78   : > { %p1456_p3 = pneg %p1455_p13  ;;  %p1462_p12 = por %p1461_p9, %p1460_p7 }
  0x7a   : > { %p1463_p10 = pnand %p1462_p12, %p1456_p3 }
  0x7c   : > { %1466 = shalt.err (!%p1463_p10)
}
  0x7d   : > { %1285 = dma.hbm_to_vmem [thread:$0]  (!%p2039_p2), %s1781_s12, 8192, %s1783_s8, %s283_s7, %s1562_s24, %s1562_s24, %s1563_s1  }
  0x7e   : > { %p2041_p8 = scmp.ne.s32.totalorder %s2036_s29, 0 }
  0x7f   : > { %p2042_p11 = scmp.eq.s32.totalorder (!%p2041_p8), %s1693_s25, 0 }
  0x80   : > { %306 = sbr.rel (%p2041_p8) target bundleno = 667 (0x29b), region = 40 }
  0x87   : > { %1518 = dma.done.wait (%p2042_p11), [#allocation4], 256   ;;  %p2043_p5 = pmov %p2042_p11 }
  0x88   : > { %s312_s10 = sand.u32 1, %s1693_s25   ;;  %s314_s15 = sand.u32 1, %s1539_s19  }
  0x89   : > { %1520 = vsyncadd (%p2043_p5), [#allocation4], 4294967040  ;;  %s1040_s30 = sshll.u32 %s314_s15, 9  ;;  %s313_s13 = scalar_lea.sflag [#allocation7], %s312_s10 }
  0x8a   : > { %s1820_s28 = scalar_lea.vmem [#allocation6], %s1040_s30  ;;  %p2044_p0 = scmp.ne.s32.totalorder %s2035_s26, 0 }
  0x8c   : > { %1522 = dma.done.wait (%p2044_p0), %s313_s13, 8256  }
  0x8d   : > { %1524 = vsyncadd (%p2044_p0), %s313_s13, 4294959040  ;;  %s1041_s29 = sshll.u32 %s314_s15, 2  ;;  %s331_s1 = scalar_lea.sflag [#allocation10], %s314_s15 }
  0x8e   : > { %s1826_s24 = scalar_lea.vmem [#allocation8], %s1041_s29  ;;  %s1828_s8 = scalar_lea.vmem [#allocation9], %s1040_s30 }
  0x8f   : > { %1526 = dma.done.wait (%p2044_p0), %s331_s1, 8192  }
  0x90   : > { %1528 = vsyncadd (%p2044_p0), %s331_s1, 4294959104  ;;  %v1566_v0 = vmov 0.0   ;;  %v380_v1 = vld [vmem:[%s1820_s28 + $0x8] sm:$0xff]  ;;  %v382_v3 = vld [vmem:[%s1820_s28 + $0x18] sm:$0xff]  ;;  %p1043_p2 = scmp.ne.s32.totalorder %s1547_s21, 0 }
  0x91   : > { %529 = vmatprep.mubr.f32.mxu0 %v1566_v0  ;;  %606 = vmatprep.mubr.f32.mxu1 %v1566_v0  ;;  %v384_v2 = vld [vmem:[%s1820_s28 + $0x28] sm:$0xff]  ;;  %v386_v5 = vld [vmem:[%s1820_s28 + $0x38] sm:$0xff]  ;;  %v379_v6 = vld [vmem:[%s1820_s28] sm:$0xff] }
  0x92   : > { %v1130_v4 = vpack.c.bf16 %v384_v2, %v380_v1  ;;  %v383_v7 = vld [vmem:[%s1820_s28 + $0x20] sm:$0xff]  ;;  %v1162_v8 = vpack.c.bf16 %v386_v5, %v382_v3  ;;  %v381_v10 = vld [vmem:[%s1820_s28 + $0x10] sm:$0xff]  ;;  %v388_v12 = vld [vmem:[%s1820_s28 + $0x48] sm:$0xff] }
  0x93   : > { %v1132_v9 = vpack.c.bf16 %v383_v7, %v379_v6  ;;  %v385_v11 = vld [vmem:[%s1820_s28 + $0x30] sm:$0xff]  ;;  %v392_v14 = vld [vmem:[%s1820_s28 + $0x68] sm:$0xff]  ;;  %v390_v15 = vld [vmem:[%s1820_s28 + $0x58] sm:$0xff] }
  0x94   : > { %1131 = vmatprep.subr.bf16.mxu0 %v1130_v4  ;;  %v1164_v13 = vpack.c.bf16 %v385_v11, %v381_v10  ;;  %v394_v16 = vld [vmem:[%s1820_s28 + $0x78] sm:$0xff]  ;;  %1163 = vmatprep.subr.bf16.mxu1 %v1162_v8  ;;  %v1134_v17 = vpack.c.bf16 %v392_v14, %v388_v12  ;;  %v387_v19 = vld [vmem:[%s1820_s28 + $0x40] sm:$0xff]  ;;  %v389_v21 = vld [vmem:[%s1820_s28 + $0x50] sm:$0xff] }
  0x95   : > { %1133 = vmatpush1.bf16.msra.mxu0 %v1132_v9  ;;  %v1166_v18 = vpack.c.bf16 %v394_v16, %v390_v15  ;;  %v391_v20 = vld [vmem:[%s1820_s28 + $0x60] sm:$0xff]  ;;  %v393_v23 = vld [vmem:[%s1820_s28 + $0x70] sm:$0xff]  ;;  %v396_v24 = vld [vmem:[%s1820_s28 + $0x88] sm:$0xff] }
  0x96   : > { %1165 = vmatpush1.bf16.msra.mxu1 %v1164_v13  ;;  %v1136_v22 = vpack.c.bf16 %v391_v20, %v387_v19  ;;  %v400_v25 = vld [vmem:[%s1820_s28 + $0xa8] sm:$0xff]  ;;  %1135 = vmatprep.subr.bf16.mxu0 %v1134_v17  ;;  %v1168_v26 = vpack.c.bf16 %v393_v23, %v389_v21  ;;  %v398_v28 = vld [vmem:[%s1820_s28 + $0x98] sm:$0xff]  ;;  %v395_v30 = vld [vmem:[%s1820_s28 + $0x80] sm:$0xff] }
  0x97   : > { %1167 = vmatprep.subr.bf16.mxu1 %v1166_v18  ;;  %v1138_v27 = vpack.c.bf16 %v400_v25, %v396_v24  ;;  %v402_v29 = vld [vmem:[%s1820_s28 + $0xb8] sm:$0xff]  ;;  %v399_v32 = vld [vmem:[%s1820_s28 + $0xa0] sm:$0xff]  ;;  %v397_v33 = vld [vmem:[%s1820_s28 + $0x90] sm:$0xff] }
  0x98   : > { %v1170_v31 = vpack.c.bf16 %v402_v29, %v398_v28  ;;  %v401_v34 = vld [vmem:[%s1820_s28 + $0xb0] sm:$0xff]  ;;  %v1140_v35 = vpack.c.bf16 %v399_v32, %v395_v30  ;;  %v404_v36 = vld [vmem:[%s1820_s28 + $0xc8] sm:$0xff]  ;;  %v406_v38 = vld [vmem:[%s1820_s28 + $0xd8] sm:$0xff] }
  0x99   : > { %1137 = vmatpush1.bf16.msra.mxu0 %v1136_v22  ;;  %v408_v37 = vld [vmem:[%s1820_s28 + $0xe8] sm:$0xff]  ;;  %v1172_v39 = vpack.c.bf16 %v401_v34, %v397_v33  ;;  %v410_v41 = vld [vmem:[%s1820_s28 + $0xf8] sm:$0xff]  ;;  %v403_v42 = vld [vmem:[%s1820_s28 + $0xc0] sm:$0xff] }
  0x9a   : > { %1169 = vmatpush1.bf16.msra.mxu1 %v1168_v26  ;;  %1139 = vmatprep.subr.bf16.mxu0 %v1138_v27  ;;  %v1142_v40 = vpack.c.bf16 %v408_v37, %v404_v36  ;;  %v407_v43 = vld [vmem:[%s1820_s28 + $0xe0] sm:$0xff]  ;;  %v1174_v44 = vpack.c.bf16 %v410_v41, %v406_v38  ;;  %v405_v45 = vld [vmem:[%s1820_s28 + $0xd0] sm:$0xff]  ;;  %v412_v47 = vld [vmem:[%s1820_s28 + $0x108] sm:$0xff] }
  0x9b   : > { %1171 = vmatprep.subr.bf16.mxu1 %v1170_v31  ;;  %v409_v46 = vld [vmem:[%s1820_s28 + $0xf0] sm:$0xff]  ;;  %v416_v48 = vld [vmem:[%s1820_s28 + $0x128] sm:$0xff]  ;;  %v414_v49 = vld [vmem:[%s1820_s28 + $0x118] sm:$0xff]  ;;  %v1144_v51 = vpack.c.bf16 %v407_v43, %v403_v42 }
  0x9c   : > { %v418_v50 = vld [vmem:[%s1820_s28 + $0x138] sm:$0xff]  ;;  %v1176_v52 = vpack.c.bf16 %v409_v46, %v405_v45  ;;  %v1146_v53 = vpack.c.bf16 %v416_v48, %v412_v47  ;;  %v411_v54 = vld [vmem:[%s1820_s28 + $0x100] sm:$0xff]  ;;  %v413_v56 = vld [vmem:[%s1820_s28 + $0x110] sm:$0xff] }
  0x9d   : > { %1141 = vmatpush1.bf16.msra.mxu0 %v1140_v35  ;;  %v415_v55 = vld [vmem:[%s1820_s28 + $0x120] sm:$0xff]  ;;  %v1178_v57 = vpack.c.bf16 %v418_v50, %v414_v49  ;;  %v417_v58 = vld [vmem:[%s1820_s28 + $0x130] sm:$0xff]  ;;  %v420_v59 = vld [vmem:[%s1820_s28 + $0x148] sm:$0xff] }
  0x9e   : > { %1173 = vmatpush1.bf16.msra.mxu1 %v1172_v39  ;;  %1143 = vmatprep.subr.bf16.mxu0 %v1142_v40  ;;  %v424_v60 = vld [vmem:[%s1820_s28 + $0x168] sm:$0xff]  ;;  %v422_v61 = vld [vmem:[%s1820_s28 + $0x158] sm:$0xff]  ;;  %v1148_v63 = vpack.c.bf16 %v415_v55, %v411_v54  ;;  %v1180_v1 = vpack.c.bf16 %v417_v58, %v413_v56  ;;  %v419_v3 = vld [vmem:[%s1820_s28 + $0x140] sm:$0xff] }
  0x9f   : > { %1175 = vmatprep.subr.bf16.mxu1 %v1174_v44  ;;  %v426_v62 = vld [vmem:[%s1820_s28 + $0x178] sm:$0xff]  ;;  %v1150_v2 = vpack.c.bf16 %v424_v60, %v420_v59  ;;  %v423_v4 = vld [vmem:[%s1820_s28 + $0x160] sm:$0xff]  ;;  %v421_v5 = vld [vmem:[%s1820_s28 + $0x150] sm:$0xff] }
  0xa0   : > { %v1182_v6 = vpack.c.bf16 %v426_v62, %v422_v61  ;;  %v425_v7 = vld [vmem:[%s1820_s28 + $0x170] sm:$0xff]  ;;  %v428_v8 = vld [vmem:[%s1820_s28 + $0x188] sm:$0xff]  ;;  %v430_v10 = vld [vmem:[%s1820_s28 + $0x198] sm:$0xff]  ;;  %v1152_v12 = vpack.c.bf16 %v423_v4, %v419_v3 }
  0xa1   : > { %1145 = vmatpush1.bf16.msra.mxu0 %v1144_v51  ;;  %v432_v9 = vld [vmem:[%s1820_s28 + $0x1a8] sm:$0xff]  ;;  %v434_v11 = vld [vmem:[%s1820_s28 + $0x1b8] sm:$0xff]  ;;  %v1184_v13 = vpack.c.bf16 %v425_v7, %v421_v5  ;;  %v427_v15 = vld [vmem:[%s1820_s28 + $0x180] sm:$0xff] }
  0xa2   : > { %1177 = vmatpush1.bf16.msra.mxu1 %v1176_v52  ;;  %1147 = vmatprep.subr.bf16.mxu0 %v1146_v53  ;;  %v1154_v14 = vpack.c.bf16 %v432_v9, %v428_v8  ;;  %v431_v16 = vld [vmem:[%s1820_s28 + $0x1a0] sm:$0xff]  ;;  %v429_v17 = vld [vmem:[%s1820_s28 + $0x190] sm:$0xff]  ;;  %v1186_v18 = vpack.c.bf16 %v434_v11, %v430_v10  ;;  %v436_v20 = vld [vmem:[%s1820_s28 + $0x1c8] sm:$0xff] }
  0xa3   : > { %1179 = vmatprep.subr.bf16.mxu1 %v1178_v57  ;;  %v433_v19 = vld [vmem:[%s1820_s28 + $0x1b0] sm:$0xff]  ;;  %v440_v21 = vld [vmem:[%s1820_s28 + $0x1e8] sm:$0xff]  ;;  %v438_v22 = vld [vmem:[%s1820_s28 + $0x1d8] sm:$0xff]  ;;  %v1156_v24 = vpack.c.bf16 %v431_v16, %v427_v15 }
  0xa4   : > { %v442_v23 = vld [vmem:[%s1820_s28 + $0x1f8] sm:$0xff]  ;;  %v1188_v25 = vpack.c.bf16 %v433_v19, %v429_v17  ;;  %v1158_v26 = vpack.c.bf16 %v440_v21, %v436_v20  ;;  %v435_v27 = vld [vmem:[%s1820_s28 + $0x1c0] sm:$0xff]  ;;  %v437_v29 = vld [vmem:[%s1820_s28 + $0x1d0] sm:$0xff] }
  0xa5   : > { %1149 = vmatpush1.bf16.msra.mxu0 %v1148_v63  ;;  %v439_v28 = vld [vmem:[%s1820_s28 + $0x1e0] sm:$0xff]  ;;  %v1190_v30 = vpack.c.bf16 %v442_v23, %v438_v22  ;;  %v441_v31 = vld [vmem:[%s1820_s28 + $0x1f0] sm:$0xff]  ;;  %v643_v32 = vld [vmem:[%s1828_s8 + $0x80] sm:$0xff] }
  0xa6   : > { %1181 = vmatpush1.bf16.msra.mxu1 %v1180_v1  ;;  %1151 = vmatprep.subr.bf16.mxu0 %v1150_v2  ;;  %v644_v33 = vld [vmem:[%s1828_s8 + $0x88] sm:$0xff]  ;;  %v675_v34 = vld [vmem:[%s1828_s8 + $0x180] sm:$0xff]  ;;  %v1160_v36 = vpack.c.bf16 %v439_v28, %v435_v27  ;;  %v1192_v37 = vpack.c.bf16 %v441_v31, %v437_v29  ;;  %v645_v44 = vld [vmem:[%s1828_s8 + $0x90] sm:$0xff] }
  0xa7   : > { %1183 = vmatprep.subr.bf16.mxu1 %v1182_v6  ;;  %v676_v35 = vld [vmem:[%s1828_s8 + $0x188] sm:$0xff]  ;;  %v1194_v38 = vpack.c.bf16 %v644_v33, %v643_v32  ;;  %v627_v40 = vld [vmem:[%s1828_s8] sm:$0xff]  ;;  %v646_v45 = vld [vmem:[%s1828_s8 + $0x98] sm:$0xff] }
  0xa8   : > { %v1226_v39 = vpack.c.bf16 %v676_v35, %v675_v34  ;;  %v628_v41 = vld [vmem:[%s1828_s8 + $0x8] sm:$0xff]  ;;  %v659_v42 = vld [vmem:[%s1828_s8 + $0x100] sm:$0xff]  ;;  %v677_v47 = vld [vmem:[%s1828_s8 + $0x190] sm:$0xff]  ;;  %v1198_v51 = vpack.c.bf16 %v646_v45, %v645_v44 }
  0xa9   : > { %1153 = vmatpush1.bf16.msra.mxu0 %v1152_v12  ;;  %v660_v43 = vld [vmem:[%s1828_s8 + $0x108] sm:$0xff]  ;;  %v678_v48 = vld [vmem:[%s1828_s8 + $0x198] sm:$0xff]  ;;  %v1196_v49 = vpack.c.bf16 %v628_v41, %v627_v40  ;;  %v629_v52 = vld [vmem:[%s1828_s8 + $0x10] sm:$0xff] }
  0xaa   : > { %1185 = vmatpush1.bf16.msra.mxu1 %v1184_v13  ;;  %1155 = vmatprep.subr.bf16.mxu0 %v1154_v14  ;;  %v377_v46 = vld [vmem:[#allocation3] sm:$0xff]  ;;  %v1228_v50 = vpack.c.bf16 %v660_v43, %v659_v42  ;;  %v630_v53 = vld [vmem:[%s1828_s8 + $0x18] sm:$0xff]  ;;  %v661_v54 = vld [vmem:[%s1828_s8 + $0x110] sm:$0xff]  ;;  %v1230_v55 = vpack.c.bf16 %v678_v48, %v677_v47 }
  0xab   : > { %1187 = vmatprep.subr.bf16.mxu1 %v1186_v18  ;;  %v662_v56 = vld [vmem:[%s1828_s8 + $0x118] sm:$0xff]  ;;  %v647_v57 = vld [vmem:[%s1828_s8 + $0xa0] sm:$0xff]  ;;  %v648_v58 = vld [vmem:[%s1828_s8 + $0xa8] sm:$0xff]  ;;  %v1200_v62 = vpack.c.bf16 %v630_v53, %v629_v52 }
  0xac   : > { %v378_v59 = vld [vmem:[#allocation3 + $0x8] sm:$0xff]  ;;  %v679_v60 = vld [vmem:[%s1828_s8 + $0x1a0] sm:$0xff]  ;;  %v680_v61 = vld [vmem:[%s1828_s8 + $0x1a8] sm:$0xff]  ;;  %v1232_v63 = vpack.c.bf16 %v662_v56, %v661_v54  ;;  %v1202_v1 = vpack.c.bf16 %v648_v58, %v647_v57 }
  0xad   : > { %1157 = vmatpush1.bf16.msra.mxu0 %v1156_v24  ;;  %v631_v2 = vld [vmem:[%s1828_s8 + $0x20] sm:$0xff]  ;;  %v632_v3 = vld [vmem:[%s1828_s8 + $0x28] sm:$0xff]  ;;  %v1234_v5 = vpack.c.bf16 %v680_v61, %v679_v60  ;;  %v649_v7 = vld [vmem:[%s1828_s8 + $0xb0] sm:$0xff] }
  0xae   : > { %1189 = vmatpush1.bf16.msra.mxu1 %v1188_v25  ;;  %1159 = vmatprep.subr.bf16.mxu0 %v1158_v26  ;;  %v663_v4 = vld [vmem:[%s1828_s8 + $0x120] sm:$0xff]  ;;  %v664_v6 = vld [vmem:[%s1828_s8 + $0x128] sm:$0xff]  ;;  %v681_v8 = vld [vmem:[%s1828_s8 + $0x1b0] sm:$0xff]  ;;  %v1204_v10 = vpack.c.bf16 %v632_v3, %v631_v2 }
  0xaf   : > { %1191 = vmatprep.subr.bf16.mxu1 %v1190_v30  ;;  %v682_v9 = vld [vmem:[%s1828_s8 + $0x1b8] sm:$0xff]  ;;  %v1236_v11 = vpack.c.bf16 %v664_v6, %v663_v4  ;;  %v633_v13 = vld [vmem:[%s1828_s8 + $0x30] sm:$0xff]  ;;  %v651_v18 = vld [vmem:[%s1828_s8 + $0xc0] sm:$0xff] }
  0xb0   : > { %v634_v14 = vld [vmem:[%s1828_s8 + $0x38] sm:$0xff]  ;;  %v665_v15 = vld [vmem:[%s1828_s8 + $0x130] sm:$0xff]  ;;  %v1238_v16 = vpack.c.bf16 %v682_v9, %v681_v8  ;;  %v652_v19 = vld [vmem:[%s1828_s8 + $0xc8] sm:$0xff] }
  0xb1   : > { %1161 = vmatpush1.bf16.msra.mxu0 %v1160_v36  ;;  %v666_v17 = vld [vmem:[%s1828_s8 + $0x138] sm:$0xff]  ;;  %v683_v20 = vld [vmem:[%s1828_s8 + $0x1c0] sm:$0xff]  ;;  %v684_v21 = vld [vmem:[%s1828_s8 + $0x1c8] sm:$0xff]  ;;  %v1208_v22 = vpack.c.bf16 %v634_v14, %v633_v13  ;;  %v1210_v24 = vpack.c.bf16 %v652_v19, %v651_v18 }
  0xb2   : > { %1193 = vmatpush1.bf16.msra.mxu1 %v1192_v37  ;;  %1195 = vmatprep.subr.bf16.mxu0 %v1194_v38  ;;  %v1240_v23 = vpack.c.bf16 %v666_v17, %v665_v15  ;;  %v635_v25 = vld [vmem:[%s1828_s8 + $0x40] sm:$0xff]  ;;  %v636_v26 = vld [vmem:[%s1828_s8 + $0x48] sm:$0xff]  ;;  %v1242_v28 = vpack.c.bf16 %v684_v21, %v683_v20  ;;  %v653_v30 = vld [vmem:[%s1828_s8 + $0xd0] sm:$0xff] }
  0xb3   : > { %1227 = vmatprep.subr.bf16.mxu1 %v1226_v39  ;;  %v667_v27 = vld [vmem:[%s1828_s8 + $0x140] sm:$0xff]  ;;  %v668_v29 = vld [vmem:[%s1828_s8 + $0x148] sm:$0xff]  ;;  %v654_v31 = vld [vmem:[%s1828_s8 + $0xd8] sm:$0xff]  ;;  %v1212_v34 = vpack.c.bf16 %v636_v26, %v635_v25 }
  0xb4   : > { %530 = vmatmul.mubr.f32.vlgmr.msra.gmra.mrb[0].mxu0 %v377_v46  ;;  %v685_v32 = vld [vmem:[%s1828_s8 + $0x1d0] sm:$0xff]  ;;  %v686_v33 = vld [vmem:[%s1828_s8 + $0x1d8] sm:$0xff]  ;;  %v1244_v35 = vpack.c.bf16 %v668_v29, %v667_v27  ;;  %v1214_v36 = vpack.c.bf16 %v654_v31, %v653_v30  ;;  %v655_v42 = vld [vmem:[%s1828_s8 + $0xe0] sm:$0xff] }
  0xb5   : > { %607 = vmatmul.mubr.f32.vlgmr.msra.gmra.mrb[0].mxu1 %v377_v46  ;;  %535 = vmatprep.mubr.f32.mxu0 %v1566_v0  ;;  %v637_v37 = vld [vmem:[%s1828_s8 + $0x50] sm:$0xff]  ;;  %v638_v38 = vld [vmem:[%s1828_s8 + $0x58] sm:$0xff]  ;;  %v1246_v40 = vpack.c.bf16 %v686_v33, %v685_v32  ;;  %v656_v43 = vld [vmem:[%s1828_s8 + $0xe8] sm:$0xff] }
  0xb6   : > { %612 = vmatprep.mubr.f32.mxu1 %v1566_v0  ;;  %1197 = vmatpush3.bf16.msra.mxu0 %v1196_v49  ;;  %v650_v0 = vld [vmem:[%s1828_s8 + $0xb8] sm:$0xff]  ;;  %v669_v39 = vld [vmem:[%s1828_s8 + $0x150] sm:$0xff]  ;;  %v687_v44 = vld [vmem:[%s1828_s8 + $0x1e0] sm:$0xff]  ;;  %v1216_v46 = vpack.c.bf16 %v638_v38, %v637_v37  ;;  %v1218_v48 = vpack.c.bf16 %v656_v43, %v655_v42 }
  0xb7   : > { %1229 = vmatpush3.bf16.msra.mxu1 %v1228_v50  ;;  %1199 = vmatprep.subr.bf16.mxu0 %v1198_v51  ;;  %v1206_v12 = vpack.c.bf16 %v650_v0, %v649_v7  ;;  %v670_v41 = vld [vmem:[%s1828_s8 + $0x158] sm:$0xff]  ;;  %v688_v45 = vld [vmem:[%s1828_s8 + $0x1e8] sm:$0xff]  ;;  %v639_v50 = vld [vmem:[%s1828_s8 + $0x60] sm:$0xff] }
  0xb8   : > { %536 = vmatmul.mubr.f32.gmra.mrb[2].mxu0 %v378_v59  ;;  %1231 = vmatprep.subr.bf16.mxu1 %v1230_v55  ;;  %v1248_v47 = vpack.c.bf16 %v670_v41, %v669_v39  ;;  %v1250_v49 = vpack.c.bf16 %v688_v45, %v687_v44  ;;  %v640_v51 = vld [vmem:[%s1828_s8 + $0x68] sm:$0xff]  ;;  %v671_v52 = vld [vmem:[%s1828_s8 + $0x160] sm:$0xff]  ;;  %v657_v56 = vld [vmem:[%s1828_s8 + $0xf0] sm:$0xff] }
  0xb9   : > { %613 = vmatmul.mubr.f32.gmra.mrb[2].mxu1 %v378_v59  ;;  %v1220_v53 = vpack.c.bf16 %v640_v51, %v639_v50  ;;  %v672_v54 = vld [vmem:[%s1828_s8 + $0x168] sm:$0xff]  ;;  %v658_v57 = vld [vmem:[%s1828_s8 + $0xf8] sm:$0xff]  ;;  %v689_v58 = vld [vmem:[%s1828_s8 + $0x1f0] sm:$0xff] }
  0xba   : > { %1201 = vmatpush3.bf16.msra.mxu0 %v1200_v62  ;;  %v1252_v55 = vpack.c.bf16 %v672_v54, %v671_v52  ;;  %v1222_v59 = vpack.c.bf16 %v658_v57, %v657_v56  ;;  %v690_v60 = vld [vmem:[%s1828_s8 + $0x1f8] sm:$0xff]  ;;  %v641_v61 = vld [vmem:[%s1828_s8 + $0x70] sm:$0xff] }
  0xbb   : > { %1233 = vmatpush3.bf16.msra.mxu1 %v1232_v63  ;;  %1203 = vmatprep.subr.bf16.mxu0 %v1202_v1  ;;  %v642_v62 = vld [vmem:[%s1828_s8 + $0x78] sm:$0xff]  ;;  %v1254_v63 = vpack.c.bf16 %v690_v60, %v689_v58  ;;  %v673_v2 = vld [vmem:[%s1828_s8 + $0x170] sm:$0xff] }
  0xbc   : > { %1235 = vmatprep.subr.bf16.mxu1 %v1234_v5  ;;  %v1224_v1 = vpack.c.bf16 %v642_v62, %v641_v61  ;;  %v674_v3 = vld [vmem:[%s1828_s8 + $0x178] sm:$0xff]  ;;  %v445_v5 = vlaneseq }
  0xbd   : > { %v1256_v4 = vpack.c.bf16 %v674_v3, %v673_v2  ;;  %v443_v0 = vld [vmem:[%s1826_s24] sm:$0xf] }
  0xbe   : > { %1205 = vmatpush3.bf16.msra.mxu0 %v1204_v10  ;;  %v446_v6 = vshrl.u32 %v445_v5, 7 }
  0xbf   : > { %1237 = vmatpush3.bf16.msra.mxu1 %v1236_v11  ;;  %1207 = vmatprep.subr.bf16.mxu0 %v1206_v12 }
  0xc0   : > { %1239 = vmatprep.subr.bf16.mxu1 %v1238_v16  ;;  %v447_v7 = vsub.s32 0, %v446_v6  ;;  %v455_v8 = vsub.s32 2, %v446_v6  ;;  %v451_v9 = vsub.s32 1, %v446_v6  ;;  %v459_v10 = vsub.s32 3, %v446_v6 }
  0xc2   : > { %1209 = vmatpush3.bf16.msra.mxu0 %v1208_v22  ;;  %v448_v11 = vrot.slane %v443_v0, %v447_v7  ;;  %v456_v12 = vrot.slane %v443_v0, %v455_v8  ;;  %v452_v13 = vrot.slane %v443_v0, %v451_v9  ;;  %v460_v14 = vrot.slane %v443_v0, %v459_v10 }
  0xc3   : > { %1241 = vmatpush3.bf16.msra.mxu1 %v1240_v23  ;;  %1211 = vmatprep.subr.bf16.mxu0 %v1210_v24 }
  0xc4   : > { %1243 = vmatprep.subr.bf16.mxu1 %v1242_v28 }
  0xc6   : > { %1213 = vmatpush3.bf16.msra.mxu0 %v1212_v34 }
  0xc7   : > { %1245 = vmatpush3.bf16.msra.mxu1 %v1244_v35  ;;  %1215 = vmatprep.subr.bf16.mxu0 %v1214_v36 }
  0xc8   : > { %1247 = vmatprep.subr.bf16.mxu1 %v1246_v40 }
  0xca   : > { %1217 = vmatpush3.bf16.msra.mxu0 %v1216_v46 }
  0xcb   : > { %1249 = vmatpush3.bf16.msra.mxu1 %v1248_v47  ;;  %1219 = vmatprep.subr.bf16.mxu0 %v1218_v48 }
  0xcc   : > { %1251 = vmatprep.subr.bf16.mxu1 %v1250_v49 }
  0xce   : > { %1221 = vmatpush3.bf16.msra.mxu0 %v1220_v53 }
  0xcf   : > { %1253 = vmatpush3.bf16.msra.mxu1 %v1252_v55  ;;  %1223 = vmatprep.subr.bf16.mxu0 %v1222_v59 }
  0xd0   : > { %1255 = vmatprep.subr.bf16.mxu1 %v1254_v63 }
  0xd2   : > { %1225 = vmatpush3.bf16.msra.mxu0 %v1224_v1 }
  0xd3   : > { %1257 = vmatpush3.bf16.msra.mxu1 %v1256_v4 }
 0x187   : > { %v531_v15 = vpop.f32.mrb[0].mxu0 }
 0x188   : > { %v532_v16 = vadd.f32 %v531_v15, %v448_v11  ;;  %v608_v17 = vpop.f32.mrb[0].mxu1  ;;  %v533_v18 = vpop.f32.mrb[1].mxu0 }
 0x189   : > { %v609_v19 = vadd.f32 %v608_v17, %v456_v12  ;;  %v534_v20 = vadd.f32 %v533_v18, %v452_v13  ;;  %v610_v21 = vpop.f32.mrb[1].mxu1 }
 0x18a   : > { %v611_v22 = vadd.f32 %v610_v21, %v460_v14  ;;  %v619_v25 = vmax.f32 %v532_v16, 0.0 }
 0x18b   : > { %v620_v23 = vmax.f32 %v534_v20, 0.0  ;;  %v537_v24 = vpop.f32.mrb[2].mxu0  ;;  %v621_v30 = vmax.f32 %v609_v19, 0.0 }
 0x18c   : > { %v622_v26 = vmax.f32 %v611_v22, 0.0  ;;  %v538_v27 = vadd.f32 %v537_v24, %v448_v11  ;;  %v614_v28 = vpop.f32.mrb[2].mxu1  ;;  %v539_v29 = vpop.f32.mrb[3].mxu0 }
 0x18d   : > { %v615_v31 = vadd.f32 %v614_v28, %v456_v12  ;;  %v540_v32 = vadd.f32 %v539_v29, %v452_v13  ;;  %v616_v33 = vpop.f32.mrb[3].mxu1  ;;  %755 = vmatprep.mubr.f32.mxu0 %v620_v23 }
 0x18e   : > { %v617_v34 = vadd.f32 %v616_v33, %v460_v14  ;;  %830 = vmatprep.mubr.f32.mxu1 %v622_v26  ;;  %756 = vmatmul.mubr.f32.vlgmr.msra.gmra.mrb[4].mxu0 %v619_v25  ;;  %v623_v36 = vmax.f32 %v538_v27, 0.0 }
 0x18f   : > { %v624_v35 = vmax.f32 %v540_v32, 0.0  ;;  %831 = vmatmul.mubr.f32.vlgmr.msra.gmra.mrb[4].mxu1 %v621_v30  ;;  %v625_v38 = vmax.f32 %v615_v31, 0.0 }
 0x190   : > { %v626_v37 = vmax.f32 %v617_v34, 0.0 }
 0x191   : > { %760 = vmatprep.mubr.f32.mxu0 %v624_v35 }
 0x192   : > { %835 = vmatprep.mubr.f32.mxu1 %v626_v37  ;;  %761 = vmatmul.mubr.f32.gmra.mrb[6].mxu0 %v623_v36 }
 0x193   : > { %836 = vmatmul.mubr.f32.gmra.mrb[6].mxu1 %v625_v38 }
 0x261   : > { %v1086_v39 = vpop.f32.mrb[4].mxu0 }
 0x262   : > { %v1124_v40 = vpop.f32.mrb[4].mxu1  ;;  %v1087_v41 = vpop.f32.mrb[5].mxu0 }
 0x263   : > { %v1088_v42 = vadd.f32 %v1087_v41, %v1086_v39  ;;  %v1125_v43 = vpop.f32.mrb[5].mxu1 }
 0x264   : > { %v1126_v44 = vadd.f32 %v1125_v43, %v1124_v40  ;;  %844 = sbr.rel (%p1043_p2) target bundleno = 621 (0x26d), region = 60 }
 0x265   : > { %v1089_v45 = vpop.f32.mrb[6].mxu0 }
 0x266   : > { %v833_v46 = vadd.f32 %v1126_v44, %v1088_v42  ;;  %v1127_v47 = vpop.f32.mrb[6].mxu1  ;;  %v1090_v48 = vpop.f32.mrb[7].mxu0 }
 0x267   : > { %v1091_v49 = vadd.f32 %v1090_v48, %v1089_v45  ;;  %v1128_v50 = vpop.f32.mrb[7].mxu1 }
 0x268   : > { %v1129_v51 = vadd.f32 %v1128_v50, %v1127_v47  ;;  %845 = vst [vmem:[#allocation2] sm:$0xff] (!%p1043_p2), %v833_v46 }
 0x26a   : > { %v838_v52 = vadd.f32 %v1129_v51, %v1091_v49 }
 0x26c   : > { %846 = vst [vmem:[#allocation2 + $0x8] sm:$0xff] %v838_v52 }
 0x26d PF: > { %p1044_p1 = scmp.eq.s32.totalorder %s1547_s21, 0 }
 0x26f   : > { %850 = sbr.rel (%p1044_p1) target bundleno = 631 (0x277), region = 64 }
 0x271   : > { %v851_v53 = vld [vmem:[#allocation2] sm:$0xff] (!%p1044_p1) }
 0x272   : > { %v853_v55 = vadd.f32 (!%p1044_p1), %v851_v53, %v833_v46 }
 0x273   : > { %v852_v54 = vld [vmem:[#allocation2 + $0x8] sm:$0xff] (!%p1044_p1) }
 0x274   : > { %v854_v56 = vadd.f32 (!%p1044_p1), %v852_v54, %v838_v52  ;;  %855 = vst [vmem:[#allocation2] sm:$0xff] (!%p1044_p1), %v853_v55 }
 0x276   : > { %856 = vst [vmem:[#allocation2 + $0x8] sm:$0xff] %v854_v56 }
 0x277 PF: > { %p1045_p4 = scmp.ne.s32.totalorder %s1547_s21, 1 }
 0x278   : > { %v1046_v58 = vld [vmem:[%s2018_s4] ss:$0 sm:$0xff] (!%p1045_p4) }
 0x279   : > { %860 = sbr.rel (%p1045_p4) target bundleno = 641 (0x281), region = 68 }
 0x27c   : > { %v861_v57 = vld [vmem:[#allocation2] sm:$0xff] (!%p1045_p4) }
 0x27d   : > { %v862_v59 = vld [vmem:[#allocation2 + $0x8] sm:$0xff] (!%p1045_p4)  ;;  %v870_v60 = vadd.f32 (!%p1045_p4), %v1046_v58, %v861_v57 }
 0x27e   : > { %v871_v61 = vadd.f32 (!%p1045_p4), %v1046_v58, %v862_v59 }
 0x27f   : > { %872 = vst [vmem:[#allocation11] sm:$0xff] (!%p1045_p4), %v870_v60 }
 0x280   : > { %873 = vst [vmem:[#allocation11 + $0x8] sm:$0xff] %v871_v61 }
 0x281 PF: > { %p1289_p6 = scmp.eq.s32.totalorder %s1693_s25, 1  ;;  %s1567_s7 = smov [#allocation11]  }
 0x282   : > { %s884_s14 = sshll.u32 %s1567_s7, 4  ;;  %s885_s14 = int_to_ptr.vmem [resolvable:$true] %s884_s14 }
 0x283   : > { %s1467_s17 = scalar_lea.vmem %s885_s14, 256  ;;  %p1474_p9 = scmp.lt.s32.totalorder %s885_s14, %s885_s14 }
 0x284   : > { %p1468_p13 = scmp.ne.s32.totalorder %s885_s14, %s1467_s17  ;;  %p1475_p12 = scmp.lt.s32.totalorder %s1467_s17, %s1467_s17 }
 0x286   : > { %p1469_p3 = pnand %p1468_p13, %p1289_p6  ;;  %p1476_p10 = por %p1475_p12, %p1474_p9 }
 0x288   : > { %p1470_p7 = pneg %p1469_p3 }
 0x28a   : > { %p1477_p8 = pnand %p1476_p10, %p1470_p7 }
 0x28c   : > { %1480 = shalt.err (!%p1477_p8)
}
 0x28d   : > { %s1481_s16 = scalar_lea.hbm %s2019_s5, 256 }
 0x28e   : > { %p1482_p11 = scmp.ne.s32.totalorder %s2019_s5, %s1481_s16  ;;  %p1487_p2 = scmp.lt.u32.totalorder %s1481_s16, %s2019_s5 }
 0x290   : > { %p1483_p5 = pnand %p1482_p11, %p1289_p6 }
 0x292   : > { %p1484_p0 = pneg %p1483_p5 }
 0x294   : > { %p1489_p1 = pnand %p1487_p2, %p1484_p0 }
 0x296   : > { %1492 = shalt.err (!%p1489_p1)
}
 0x297   : > { %s1568_s10 = smov 128   ;;  %s1569_s15 = smov 8  }
 0x298   : > { %1269 = dma.vmem_to_hbm [thread:$0]  (%p1289_p6), %s885_s14, 256, %s2019_s5, [#allocation5], %s1568_s10, %s1568_s10, %s1569_s15  }
 0x299   : > { %1530 = dma.done.wait (%p1289_p6), [#allocation5], 256  }
 0x29a   : > { %1532 = vsyncadd (%p1289_p6), [#allocation5], 4294967040 }
 0x29b PF: > { %s23_s23 = sadd.s32 1, %s1555_s23   ;;  %s2045_s28 = sld [smem:[#allocation17_spill]] }
 0x29c   : > { %p20_p4 = scmp.ge.s32.totalorder %s23_s23, 4   ;;  %s2046_s29 = sld [smem:[#allocation16_spill]] }
 0x29d   : > { %s2047_s18 = smov %s1539_s19  ;;  %s2048_s19 = smov %s1543_s20 }
 0x29e   : > { %s2050_s21 = smov %s1551_s22  ;;  %22 = sbr.rel (!%p20_p4) target bundleno = 10 (0xa), region = 123 }
 0x2a1   : > { %s2049_s20 = smov %s2045_s28 }
 0x2a2   : > { %s2051_s22 = smov %s2046_s29 }
 0x2a5   :  { %900 = vsyncpa [#allocation4], 1 }
 0x2a6   :  { %902 = vsyncpa [#allocation4 + $0x1], 1 }
 0x2a7   :  { %903 = vsyncpa [#allocation7], 1 }
 0x2a8   :  { %905 = vsyncpa [#allocation7 + $0x1], 1 }
 0x2a9   :  { %906 = vsyncpa [#allocation10], 1 }
 0x2aa   :  { %908 = vsyncpa [#allocation10 + $0x1], 1 }
 0x2ab   :  { %909 = vsyncpa [#allocation5], 1 }
 0x2ac   :  { %911 = vsyncpa [#allocation5 + $0x1], 1 }

</bundles_post_ra>
